<compile_context>
chip_gen: v5e
topology: v5e:2x2
jax: 0.10.0
libtpu: 0.0.40
codegen_flags: <defaults>
</compile_context>

<pallas_src>
import functools

import jax
import jax.numpy as jnp
from jax.experimental import pallas as pl
from jax.experimental.pallas import tpu as pltpu


def _avgpool3x3_kernel(masks_ref, x_ref, o_ref, xp_ref, *, W, L):
    # masks_ref: (2, L) f32   row 0: 1.0 where left  neighbour (col-1) is in-row
    #                         row 1: 1.0 where right neighbour (col+1) is in-row
    # x_ref    : (BC, L)      input planes, flattened H*W per plane
    # o_ref    : (BC, L)      output planes
    # xp_ref   : (BC, L+2W+2) f32 scratch: zero pad | plane | zero pad
    BC = x_ref.shape[0]
    P = W + 1  # pad width on each side of the flattened row

    # Refresh the zero pads every step (cheap; keeps the kernel correct under
    # megacore grid sharding, where program_id==0 may never run on a core).
    zpad = jnp.zeros((BC, P), jnp.float32)
    xp_ref[:, 0:P] = zpad
    xp_ref[:, P + L:P + L + P] = zpad

    # Single upcast per element, stored once into the padded scratch.
    xp_ref[:, P:P + L] = x_ref[...].astype(jnp.float32)

    lm = masks_ref[0:1, :]  # (1, L), broadcast over BC planes
    rm = masks_ref[1:2, :]

    # Vertical 3-sums of the centre / left / right columns of the 3x3 window.
    # Output pixel p sits at padded index p + P; neighbour offset d is a static
    # lane slice starting at P + d.  Rows above/below the plane land in the
    # zero pads; the left/right columns are masked at row edges (lane wrap).
    v0 = (xp_ref[:, 1:1 + L]
          + xp_ref[:, W + 1:W + 1 + L]
          + xp_ref[:, 2 * W + 1:2 * W + 1 + L])
    vl = (xp_ref[:, 0:L]
          + xp_ref[:, W:W + L]
          + xp_ref[:, 2 * W:2 * W + L])
    vr = (xp_ref[:, 2:2 + L]
          + xp_ref[:, W + 2:W + 2 + L]
          + xp_ref[:, 2 * W + 2:2 * W + 2 + L])

    out = (v0 + vl * lm + vr * rm) * (1.0 / 9.0)
    o_ref[...] = out.astype(o_ref.dtype)


def pool_forward(x):
    """AvgPool2d(3, stride=1, padding=1), count_include_pad=True. x: (N,C,H,W)."""
    N, C, H, W = x.shape
    NC = N * C
    L = H * W
    Lp = L + 2 * (W + 1)

    # Free (contiguous) reshape: planes become lane-dense length-L rows.
    x2 = x.reshape(NC, L)

    # Row-edge validity masks for the left/right columns of the 3x3 window.
    col = jnp.arange(L, dtype=jnp.int32) % W
    masks = jnp.stack([(col > 0), (col < W - 1)]).astype(jnp.float32)  # (2, L)

    # Pick how many planes to process per grid step: target ~2 MiB f32 tiles,
    # keep BC a multiple of 8 (or equal to NC) for clean tiling, and stay well
    # inside v7x's 64 MiB VMEM when double-buffered.
    itemsize = jnp.dtype(x.dtype).itemsize
    tile_target = 2 * 1024 * 1024
    bc_cap = max(1, tile_target // (L * max(itemsize, 4)))
    if NC <= bc_cap:
        BC = NC
    else:
        BC = min(max(8, (bc_cap // 8) * 8), NC)
    grid = (pl.cdiv(NC, BC),)

    kernel = functools.partial(_avgpool3x3_kernel, W=W, L=L)

    out = pl.pallas_call(
        kernel,
        out_shape=jax.ShapeDtypeStruct((NC, L), x.dtype),
        grid_spec=pltpu.PrefetchScalarGridSpec(
            num_scalar_prefetch=0,
            grid=grid,
            in_specs=[
                pl.BlockSpec((2, L), lambda i: (0, 0)),   # masks (resident)
                pl.BlockSpec((BC, L), lambda i: (i, 0)),  # input planes
            ],
            out_specs=pl.BlockSpec((BC, L), lambda i: (i, 0)),
            scratch_shapes=[pltpu.VMEM((BC, Lp), jnp.float32)],
        ),
        compiler_params=pltpu.CompilerParams(
            dimension_semantics=("parallel",),
            vmem_limit_bytes=32 * 1024 * 1024,
        ),
    )(masks, x2)

    return out.reshape(N, C, H, W)


def _reference_avgpool3x3(x):
    # Pure-JAX reference: same semantics (count_include_pad=True).
    N, C, H, W = x.shape
    xp = jnp.pad(x, ((0, 0), (0, 0), (1, 1), (1, 1)))
    acc = jnp.zeros((N, C, H, W), jnp.float32)
    for di in range(3):
        for dj in range(3):
            acc = acc + xp[:, :, di:di + H, dj:dj + W].astype(jnp.float32)
    return (acc / 9.0).astype(x.dtype)


if __name__ == "__main__":
    key = jax.random.PRNGKey(0)
    N, C, H, W = 2, 4, 16, 16
    x = jax.random.normal(key, (N, C, H, W), dtype=jnp.float32)

    y = pool_forward(x)
    y = jax.block_until_ready(y)

    y_ref = _reference_avgpool3x3(x)
    assert y.shape == (N, C, H, W), y.shape
    assert jnp.allclose(y, y_ref, atol=1e-5, rtol=1e-5), "mismatch vs reference"

    print("KERNEL_OK")
</pallas_src>

<mosaic_0001>
module attributes {stable_mosaic.version = 11 : i64} {
  func.func @_avgpool3x3_kernel(%arg0: i32, %arg1: memref<2x256xf32, #tpu.memory_space<vmem>>, %arg2: memref<8x256xf32, #tpu.memory_space<vmem>>, %arg3: memref<8x256xf32, #tpu.memory_space<vmem>>, %arg4: memref<8x290xf32, #tpu.memory_space<vmem>>) attributes {dimension_semantics = [#tpu.dimension_semantics<parallel>], iteration_bounds = array<i64: 1>, scalar_prefetch = 0 : i64, scratch_operands = 1 : i64, tpu.core_type = #tpu.core_type<tc>, window_params = [{pipeline_mode = #tpu.pipeline_mode<synchronous>, transform_indices = @transform_0, window_bounds = array<i64: 2, 256>}, {transform_indices = @transform_1, window_bounds = array<i64: 8, 256>}, {transform_indices = @transform_2, window_bounds = array<i64: 8, 256>}]} {
    %cst = arith.constant 0.000000e+00 : f32
    %0 = vector.broadcast %cst : f32 to vector<8x17xf32>
    %c0 = arith.constant 0 : index
    %c0_0 = arith.constant 0 : index
    %1 = vector.load %arg4[%c0, %c0_0] : memref<8x290xf32, #tpu.memory_space<vmem>>, vector<8x17xf32>
    tpu.vector_store %arg4[%c0, %c0_0], %0 {strides = array<i32>} : memref<8x290xf32, #tpu.memory_space<vmem>>, vector<8x17xf32>,
    %c0_1 = arith.constant 0 : index
    %c273 = arith.constant 273 : index
    %2 = vector.load %arg4[%c0_1, %c273] : memref<8x290xf32, #tpu.memory_space<vmem>>, vector<8x17xf32>
    tpu.vector_store %arg4[%c0_1, %c273], %0 {strides = array<i32>} : memref<8x290xf32, #tpu.memory_space<vmem>>, vector<8x17xf32>,
    %c0_2 = arith.constant 0 : index
    %c0_3 = arith.constant 0 : index
    %3 = vector.load %arg2[%c0_2, %c0_3] : memref<8x256xf32, #tpu.memory_space<vmem>>, vector<8x256xf32>
    %c0_4 = arith.constant 0 : index
    %c17 = arith.constant 17 : index
    %4 = vector.load %arg4[%c0_4, %c17] : memref<8x290xf32, #tpu.memory_space<vmem>>, vector<8x256xf32>
    tpu.vector_store %arg4[%c0_4, %c17], %3 {strides = array<i32>} : memref<8x290xf32, #tpu.memory_space<vmem>>, vector<8x256xf32>,
    %c0_5 = arith.constant 0 : index
    %c0_6 = arith.constant 0 : index
    %5 = vector.load %arg1[%c0_5, %c0_6] : memref<2x256xf32, #tpu.memory_space<vmem>>, vector<1x256xf32>
    %c1 = arith.constant 1 : index
    %c0_7 = arith.constant 0 : index
    %6 = vector.load %arg1[%c1, %c0_7] : memref<2x256xf32, #tpu.memory_space<vmem>>, vector<1x256xf32>
    %c0_8 = arith.constant 0 : index
    %c1_9 = arith.constant 1 : index
    %7 = vector.load %arg4[%c0_8, %c1_9] : memref<8x290xf32, #tpu.memory_space<vmem>>, vector<8x256xf32>
    %c0_10 = arith.constant 0 : index
    %c17_11 = arith.constant 17 : index
    %8 = vector.load %arg4[%c0_10, %c17_11] : memref<8x290xf32, #tpu.memory_space<vmem>>, vector<8x256xf32>
    %9 = arith.addf %7, %8 : vector<8x256xf32>
    %c0_12 = arith.constant 0 : index
    %c33 = arith.constant 33 : index
    %10 = vector.load %arg4[%c0_12, %c33] : memref<8x290xf32, #tpu.memory_space<vmem>>, vector<8x256xf32>
    %11 = arith.addf %9, %10 : vector<8x256xf32>
    %c0_13 = arith.constant 0 : index
    %c0_14 = arith.constant 0 : index
    %12 = vector.load %arg4[%c0_13, %c0_14] : memref<8x290xf32, #tpu.memory_space<vmem>>, vector<8x256xf32>
    %c0_15 = arith.constant 0 : index
    %c16 = arith.constant 16 : index
    %13 = vector.load %arg4[%c0_15, %c16] : memref<8x290xf32, #tpu.memory_space<vmem>>, vector<8x256xf32>
    %14 = arith.addf %12, %13 : vector<8x256xf32>
    %c0_16 = arith.constant 0 : index
    %c32 = arith.constant 32 : index
    %15 = vector.load %arg4[%c0_16, %c32] : memref<8x290xf32, #tpu.memory_space<vmem>>, vector<8x256xf32>
    %16 = arith.addf %14, %15 : vector<8x256xf32>
    %c0_17 = arith.constant 0 : index
    %c2 = arith.constant 2 : index
    %17 = vector.load %arg4[%c0_17, %c2] : memref<8x290xf32, #tpu.memory_space<vmem>>, vector<8x256xf32>
    %c0_18 = arith.constant 0 : index
    %c18 = arith.constant 18 : index
    %18 = vector.load %arg4[%c0_18, %c18] : memref<8x290xf32, #tpu.memory_space<vmem>>, vector<8x256xf32>
    %19 = arith.addf %17, %18 : vector<8x256xf32>
    %c0_19 = arith.constant 0 : index
    %c34 = arith.constant 34 : index
    %20 = vector.load %arg4[%c0_19, %c34] : memref<8x290xf32, #tpu.memory_space<vmem>>, vector<8x256xf32>
    %21 = arith.addf %19, %20 : vector<8x256xf32>
    %22 = vector.broadcast %5 : vector<1x256xf32> to vector<8x256xf32>
    %23 = arith.mulf %16, %22 : vector<8x256xf32>
    %24 = arith.addf %11, %23 : vector<8x256xf32>
    %25 = vector.broadcast %6 : vector<1x256xf32> to vector<8x256xf32>
    %26 = arith.mulf %21, %25 : vector<8x256xf32>
    %27 = arith.addf %24, %26 : vector<8x256xf32>
    %cst_20 = arith.constant 0.111111112 : f32
    %28 = vector.broadcast %cst_20 : f32 to vector<8x256xf32>
    %29 = arith.mulf %27, %28 : vector<8x256xf32>
    %c0_21 = arith.constant 0 : index
    %c0_22 = arith.constant 0 : index
    %30 = vector.load %arg3[%c0_21, %c0_22] : memref<8x256xf32, #tpu.memory_space<vmem>>, vector<8x256xf32>
    tpu.vector_store %arg3[%c0_21, %c0_22], %29 {strides = array<i32>} : memref<8x256xf32, #tpu.memory_space<vmem>>, vector<8x256xf32>,
    return
  }
  func.func @transform_0(%arg0: i32) -> (i32, i32) {
    %c0_i32 = arith.constant 0 : i32
    %c0_i32_0 = arith.constant 0 : i32
    %c0_i32_1 = arith.constant 0 : i32
    return %c0_i32, %c0_i32_0 : i32, i32
  }
  func.func @transform_1(%arg0: i32) -> (i32, i32) {
    %c0_i32 = arith.constant 0 : i32
    %c0_i32_0 = arith.constant 0 : i32
    return %arg0, %c0_i32 : i32, i32
  }
  func.func @transform_2(%arg0: i32) -> (i32, i32) {
    %c0_i32 = arith.constant 0 : i32
    %c0_i32_0 = arith.constant 0 : i32
    return %arg0, %c0_i32 : i32, i32
  }
}

</mosaic_0001>

<bundles_post_ra>
// kernel: tpu_custom_call.1
= control target key start
LH: loop header
LB: loop body
LE: loop exit
PB: predicated region body
PF: predicated region fallthrough
CT: control target
= control target key end

     0   :  { %7 = vsyncpa [#allocation4], 0  ;;  %s326_s0 = inlined_call_operand.hbm [shape: f32[2,256], index: 0, kind: input, shape index: {}]   ;;  %s327_s1 = inlined_call_operand.hbm [shape: f32[8,256], index: 1, kind: input, shape index: {}]   ;;  %s328_s2 = inlined_call_operand.hbm [shape: f32[8,256], index: 2, kind: output, shape index: {}]  }
   0x1   :  { %8 = vsyncpa [#allocation7], 0 }
   0x2   :  { %9 = vsyncpa [#allocation5], 0  ;;  %s15_s11 = sshll.u32 %s326_s0, 4  ;;  %s277_s12 = smov [#allocation3]   ;;  %s16_s11 = int_to_ptr.hbm [resolvable:$true] %s15_s11 }
   0x3   :  { %s17_s13 = sshll.u32 %s277_s12, 4  ;;  %s26_s16 = sshll.u32 %s327_s1, 4  ;;  %s18_s13 = int_to_ptr.vmem [resolvable:$true] %s17_s13  ;;  %s27_s16 = int_to_ptr.hbm [resolvable:$true] %s26_s16 }
   0x4   :  { %20 = dma.hbm_to_vmem [thread:$0]  %s16_s11, 64, %s18_s13, [#allocation4]  }
   0x5   :  { %s278_s17 = smov [#allocation6]  }
   0x6   :  { %s28_s18 = sshll.u32 %s278_s17, 4  ;;  %s29_s18 = int_to_ptr.vmem [resolvable:$true] %s28_s18 }
   0x7   :  { %31 = dma.hbm_to_vmem [thread:$0]  %s27_s16, 256, %s29_s18, [#allocation7]  }
   0x8   :  { %271 = dma.done.wait [#allocation4], 64  }
   0x9   :  { %272 = vsyncadd [#allocation4], 4294967232 }
   0xa   :  { %273 = dma.done.wait [#allocation7], 256  }
   0xb   :  { %274 = vsyncadd [#allocation7], 4294967040  ;;  %vm40_vm0 = vcmask 138240   ;;  %v279_v0 = vmov 0.0   ;;  %v44_v1 = vld [vmem:[#allocation6] sm:$0xff]  ;;  %s280_s0 = smov 17  }
   0xc   :  { %41 = vst.msk [vmem:[#allocation2] sm:$0xff] %vm40_vm0, %v279_v0  ;;  %48 = vrot.lane.b32.xlu0 %v44_v1, %s280_s0  ;;  %v45_v2 = vld [vmem:[#allocation6 + $0x8] sm:$0xff]  ;;  %vm42_vm1 = vcmask 277640   ;;  %vm56_vm2 = vcmask 1047688   ;;  %s281_s1 = smov 112   ;;  %s282_s19 = smov 96  }
   0xd   :  { %43 = vst.msk [vmem:[#allocation2 + $0x10] sm:$0xff] %vm42_vm1, %v279_v0  ;;  %v62_v7 = vld [vmem:[#allocation3 + $0x1] ss:$2 sm:$0x3]  ;;  %s283_s20 = smov 2   ;;  %vm75_vm3 = vcmask 916480  }
   0xe   :  { %v122_v8 = vperm.slane %v62_v7, 1  ;;  %v121_v10 = vperm.slane %v62_v7, 0  ;;  %v60_v14 = vld [vmem:[#allocation3] ss:$2 sm:$0x3]  ;;  %vm90_vm4 = vcmask 785408  }
   0xf   :  { %v100_v19 = vperm.slane %v60_v14, 0  ;;  %s284_s21 = smov 127   ;;  %s285_s22 = smov 1   ;;  %vm127_vm5 = vcmask 15360   ;;  %v101_v29 = vperm.slane %v60_v14, 1  ;;  %vm112_vm6 = vcmask 7168  }
  0x10   :  { %vm144_vm7 = vcmask 1039360   ;;  %s286_s23 = smov [#allocation8]   ;;  %s178_s27 = sshll.u32 %s328_s2, 4  ;;  %s179_s27 = int_to_ptr.hbm [resolvable:$true] %s178_s27 }
  0x11   :  { %s176_s24 = sshll.u32 %s286_s23, 4  ;;  %s177_s24 = int_to_ptr.vmem [resolvable:$true] %s176_s24 }
  0x14   :  { %50 = vrot.lane.b32.xlu0 %v45_v2, %s280_s0 }
  0x7e   :  { %v49_v3 = vpop.permute.xlu0 %48 }
  0x7f   :  { %57 = vst.msk [vmem:[#allocation2] sm:$0xff] %vm56_vm2, %v49_v3 }
  0x86   :  { %v51_v4 = vpop.permute.xlu0 %50  ;;  %v63_v5 = vld [vmem:[#allocation2] sm:$0xff] }
  0x87   :  { %v52_v6 = vsel %vm40_vm0, %v49_v3, %v51_v4  ;;  %59 = vst.msk [vmem:[#allocation2 + $0x10] sm:$0xff] %vm40_vm0, %v51_v4  ;;  %69 = vrot.lane.b32.xlu1 %v63_v5, %s281_s1 }
  0x88   :  { %86 = vrot.lane.b32.xlu0 %v52_v6, %s282_s19 }
  0x8e   :  { %v65_v9 = vld [vmem:[#allocation2 + $0x10] sm:$0xff] }
  0x8f   :  { %73 = vrot.lane.b32.xlu2 %v65_v9, %s281_s1  ;;  %71 = vrot.lane.b32.xlu1 %v52_v6, %s281_s1 }
  0x90   :  { %125 = vrot.lane.b32.xlu0 %v122_v8, %s283_s20 }
  0x97   :  { %84 = vrot.lane.b32.xlu2 %v63_v5, %s282_s19  ;;  %88 = vrot.lane.b32.xlu1 %v65_v9, %s282_s19 }
  0x9f   :  { %123 = vrot.lane.b32.xlu2 %v121_v10, %s283_s20 }
  0xe9   :  { %v74_v11 = vpop.permute.xlu2 %73 }
  0xea   :  { %v83_v34 = vadd.f32 %v74_v11, %v65_v9 }
  0xf1   :  { %v85_v13 = vpop.permute.xlu2 %84 }
  0xf9   :  { %v70_v12 = vpop.permute.xlu1 %69  ;;  %v124_v21 = vpop.permute.xlu2 %123 }
  0xfa   :  { %v87_v15 = vpop.permute.xlu0 %86 }
  0xfb   :  { %v91_v20 = vsel %vm90_vm4, %v85_v13, %v87_v15 }
 0x101   :  { %v72_v16 = vpop.permute.xlu1 %71 }
 0x102   :  { %v76_v17 = vsel %vm75_vm3, %v70_v12, %v72_v16  ;;  %v77_v23 = vsel %vm75_vm3, %v72_v16, %v74_v11  ;;  %v126_v28 = vpop.permute.xlu0 %125 }
 0x103   :  { %v81_v18 = vadd.f32 %v76_v17, %v63_v5  ;;  %v82_v26 = vadd.f32 %v77_v23, %v52_v6  ;;  %v128_v32 = vsel %vm127_vm5, %v124_v21, %v126_v28 }
 0x105   :  { %v96_v22 = vadd.f32 %v91_v20, %v81_v18 }
 0x107   :  { %v132_v24 = vmul.f32 %v124_v21, %v96_v22  ;;  %v104_v25 = vmul.f32 %v100_v19, %v96_v22 }
 0x109   :  { %138 = vrot.lane.b32.xlu0 %v132_v24, %s284_s21  ;;  %108 = vrot.lane.b32.xlu1 %v104_v25, %s285_s22  ;;  %v89_v27 = vpop.permute.xlu1 %88 }
 0x10a   :  { %v92_v30 = vsel %vm90_vm4, %v87_v15, %v89_v27  ;;  %v98_v36 = vadd.f32 %v89_v27, %v83_v34 }
 0x10b   :  { %v97_v31 = vadd.f32 %v92_v30, %v82_v26 }
 0x10c   :  { %v134_v37 = vmul.f32 %v126_v28, %v98_v36 }
 0x10d   :  { %v105_v33 = vmul.f32 %v101_v29, %v97_v31  ;;  %v133_v35 = vmul.f32 %v128_v32, %v97_v31 }
 0x10f   :  { %110 = vrot.lane.b32.xlu2 %v105_v33, %s285_s22 }
 0x111   :  { %140 = vrot.lane.b32.xlu1 %v133_v35, %s284_s21 }
 0x117   :  { %142 = vrot.lane.b32.xlu2 %v134_v37, %s284_s21 }
 0x169   :  { %v111_v38 = vpop.permute.xlu2 %110 }
 0x16a   :  { %v119_v39 = vadd.f32 %v111_v38, %v98_v36 }
 0x171   :  { %v143_v40 = vpop.permute.xlu2 %142 }
 0x172   :  { %v152_v41 = vadd.f32 %v143_v40, %v119_v39 }
 0x174   :  { %v155_v42 = vmul.f32 0.11111111, %v152_v41 }
 0x176   :  { %163 = vrot.lane.b32.xlu2 %v155_v42, %s284_s21 }
 0x17b   :  { %v109_v43 = vpop.permute.xlu1 %108  ;;  %v139_v45 = vpop.permute.xlu0 %138 }
 0x17c   :  { %v113_v44 = vsel %vm112_vm6, %v109_v43, %v111_v38  ;;  %v117_v46 = vadd.f32 %v109_v43, %v96_v22 }
 0x17d   :  { %v118_v47 = vadd.f32 %v113_v44, %v97_v31 }
 0x183   :  { %v141_v48 = vpop.permute.xlu1 %140 }
 0x184   :  { %v145_v49 = vsel %vm144_vm7, %v139_v45, %v141_v48  ;;  %v146_v50 = vsel %vm144_vm7, %v141_v48, %v143_v40 }
 0x185   :  { %v150_v51 = vadd.f32 %v145_v49, %v117_v46  ;;  %v151_v52 = vadd.f32 %v146_v50, %v118_v47 }
 0x187   :  { %v153_v53 = vmul.f32 0.11111111, %v150_v51  ;;  %v154_v54 = vmul.f32 0.11111111, %v151_v52 }
 0x189   :  { %161 = vrot.lane.b32.xlu1 %v154_v54, %s284_s21  ;;  %159 = vrot.lane.b32.xlu0 %v153_v53, %s284_s21 }
 0x1d0   :  { %v164_v55 = vpop.permute.xlu2 %163 }
 0x1fb   :  { %v162_v56 = vpop.permute.xlu1 %161  ;;  %v160_v57 = vpop.permute.xlu0 %159 }
 0x1fc   :  { %v166_v58 = vsel %vm144_vm7, %v162_v56, %v164_v55  ;;  %v165_v59 = vsel %vm144_vm7, %v160_v57, %v162_v56 }
 0x1fd   :  { %170 = vst [vmem:[#allocation8 + $0x8] sm:$0xff] %v166_v58 }
 0x1fe   :  { %169 = vst [vmem:[#allocation8] sm:$0xff] %v165_v59 }
 0x1ff   :  { %181 = dma.vmem_to_hbm [thread:$0]  %s177_s24, 256, %s179_s27, [#allocation5]  }
 0x200   :  { %275 = dma.done.wait [#allocation5], 256  }
 0x201   :  { %276 = vsyncadd [#allocation5], 4294967040 }
 0x202   :  { %186 = vsyncpa [#allocation4], 1 }
 0x203   :  { %187 = vsyncpa [#allocation7], 1 }
 0x204   :  { %188 = vsyncpa [#allocation5], 1 }

</bundles_post_ra>
